<compile_context>
chip_gen: v6e
topology: v6e:2x2x1
jax: 0.10.0
libtpu: 0.0.40
codegen_flags: <defaults>
</compile_context>

<pallas_src>
import functools

import jax
import jax.numpy as jnp
from jax.experimental import pallas as pl
from jax.experimental.pallas import tpu as pltpu

BN_EPS = 1e-5
LANE = 128  # lane width / minimum feature tile


def _round_up(n, m):
    return ((n + m - 1) // m) * m


def _bn_relu(h, g, be):
    """Training-mode BatchNorm1d (biased batch variance) folded into scale/shift, then ReLU.

    Two-pass (mean-centred) variance for numerical robustness.  The preceding Linear bias is
    omitted upstream because the batch-mean subtraction cancels it exactly.
    """
    mean = jnp.mean(h, axis=0, keepdims=True)          # (1, TN) f32
    c = h - mean
    var = jnp.mean(c * c, axis=0, keepdims=True)       # biased variance, two-pass
    scale = g * jax.lax.rsqrt(var + BN_EPS)            # EUP rsqrt
    return jnp.maximum(c * scale + be, 0.0)


def _fused_block_kernel(x_ref, w1_ref, g1_ref, be1_ref, w2_ref, g2_ref, be2_ref,
                        o_ref, h1_ref, *, tn):
    """Fused (Linear -> BN -> ReLU) x2 over grid=(2 phases, n feature tiles).

    Phase 0: h1[:, tile j] = BN(ReLU(x @ w1[:, tile j]))  -> persistent VMEM scratch (bf16).
    Phase 1: out[:, tile j] = BN(ReLU(h1 @ w2[:, tile j])) read straight from VMEM.
    """
    phase = pl.program_id(0)
    j = pl.program_id(1)

    @pl.when(phase == 0)
    def _stage1():
        h = jnp.dot(x_ref[...], w1_ref[...], preferred_element_type=jnp.float32)
        y = _bn_relu(h, g1_ref[...], be1_ref[...])
        off = pl.multiple_of(j * tn, tn)
        h1_ref[:, pl.ds(off, tn)] = y.astype(h1_ref.dtype)

    @pl.when(phase == 1)
    def _stage2():
        h = jnp.dot(h1_ref[...], w2_ref[...], preferred_element_type=jnp.float32)
        y = _bn_relu(h, g2_ref[...], be2_ref[...])
        o_ref[...] = y.astype(o_ref.dtype)


def prepare_params(params, in_channels):
    """One-time layout plumbing (hoisted out of the forward path): zero-pad lane-dense to
    multiples of 128 and cast matmul operands to bf16.  Padded gamma=1 / beta=0 keep padded
    feature columns exactly zero through both stages.  Linear biases are intentionally not
    included (cancelled by training-mode BN)."""
    c_out = params["w1"].shape[1]
    k1 = _round_up(in_channels, LANE)
    n1 = _round_up(c_out, LANE)
    w1 = jnp.zeros((k1, n1), jnp.bfloat16).at[:in_channels, :c_out].set(
        params["w1"].astype(jnp.bfloat16))
    w2 = jnp.zeros((n1, n1), jnp.bfloat16).at[:c_out, :c_out].set(
        params["w2"].astype(jnp.bfloat16))
    g1 = jnp.ones((1, n1), jnp.float32).at[:, :c_out].set(params["g1"])
    be1 = jnp.zeros((1, n1), jnp.float32).at[:, :c_out].set(params["be1"])
    g2 = jnp.ones((1, n1), jnp.float32).at[:, :c_out].set(params["g2"])
    be2 = jnp.zeros((1, n1), jnp.float32).at[:, :c_out].set(params["be2"])
    return {"w1": w1, "g1": g1, "be1": be1, "w2": w2, "g2": g2, "be2": be2}


def fully_connected_block(x, pp, *, c_out, tn=None):
    """x: (B, C_in) float32.  pp: dict from prepare_params (pre-padded, pre-cast)."""
    B, c_in = x.shape
    k1, n1 = pp["w1"].shape
    assert pp["w2"].shape == (n1, n1)

    if tn is None:
        # 256-wide tiles fill the 256-wide MXU on v6e/v7x and halve per-step overhead;
        # 128 fallback keeps exact tiling when the padded feature dim is not 256-aligned.
        tn = 256 if n1 % 256 == 0 else LANE
    assert n1 % tn == 0
    n_tiles = n1 // tn
    last = n_tiles - 1

    # Pad the activation lane-dense and cast to bf16 for the MXU.
    if c_in == k1:
        x_p = x.astype(jnp.bfloat16)
    else:
        x_p = jnp.zeros((B, k1), jnp.bfloat16).at[:, :c_in].set(x.astype(jnp.bfloat16))

    # VMEM budget (bytes): resident x (1 buf) + weight tiles (2 bufs each) + gamma/beta tiles
    # + output tile (2 bufs) + persistent h1 scratch.
    vmem_need = (B * k1 * 2
                 + 2 * k1 * tn * 2
                 + 2 * n1 * tn * 2
                 + 4 * 2 * tn * 4
                 + 2 * B * tn * 4
                 + B * n1 * 2)
    vmem_limit = int(min(100 * 1024 * 1024, max(32 * 1024 * 1024, 2 * vmem_need)))

    # Phase-aware index maps: each stage's operands stream only during their own phase and are
    # pinned to a constant block index during the other phase (no redundant re-fetch).
    fc1_map = lambda p_, j: (0, j * (1 - p_) + last * p_)   # phase 0: j ; phase 1: pinned
    fc2_map = lambda p_, j: (0, j * p_)                     # phase 0: pinned ; phase 1: j

    out = pl.pallas_call(
        functools.partial(_fused_block_kernel, tn=tn),
        out_shape=jax.ShapeDtypeStruct((B, n1), jnp.float32),
        grid_spec=pltpu.PrefetchScalarGridSpec(
            num_scalar_prefetch=0,
            grid=(2, n_tiles),
            in_specs=[
                # Resident activation: constant block index -> single buffer is enough.
                pl.BlockSpec((B, k1), lambda p_, j: (0, 0),
                             pipeline_mode=pl.Buffered(1)),
                pl.BlockSpec((k1, tn), fc1_map),   # w1 tile
                pl.BlockSpec((1, tn), fc1_map),    # gamma1 tile
                pl.BlockSpec((1, tn), fc1_map),    # beta1 tile
                pl.BlockSpec((n1, tn), fc2_map),   # w2 tile
                pl.BlockSpec((1, tn), fc2_map),    # gamma2 tile
                pl.BlockSpec((1, tn), fc2_map),    # beta2 tile
            ],
            # Output pinned to tile 0 during phase 0 (never written there, and the unchanged
            # block index means no garbage write-back); streamed lane-dense during phase 1.
            out_specs=pl.BlockSpec((B, tn), fc2_map),
            scratch_shapes=[pltpu.VMEM((B, n1), jnp.bfloat16)],   # persistent h1
        ),
        compiler_params=pltpu.CompilerParams(
            # Phase axis is a hard dependency and the feature axis feeds a shared VMEM
            # scratch, so both stay sequential on one core.
            dimension_semantics=("arbitrary", "arbitrary"),
            vmem_limit_bytes=vmem_limit,
        ),
    )(x_p, pp["w1"], pp["g1"], pp["be1"], pp["w2"], pp["g2"], pp["be2"])

    return out[:, :c_out]


def init_params(key, in_channels, out_channels):
    """PyTorch-faithful f32 parameters. Linear weights stored pre-transposed as (C_in, C_out).
    Biases are kept for module fidelity but are dead under training-mode BN."""
    k1, k2, k3, k4 = jax.random.split(key, 4)
    bound1 = 1.0 / jnp.sqrt(in_channels)
    bound2 = 1.0 / jnp.sqrt(out_channels)
    return {
        "w1": jax.random.uniform(k1, (in_channels, out_channels), jnp.float32, -bound1, bound1),
        "b1": jax.random.uniform(k2, (1, out_channels), jnp.float32, -bound1, bound1),
        "g1": jnp.ones((1, out_channels), jnp.float32),
        "be1": jnp.zeros((1, out_channels), jnp.float32),
        "w2": jax.random.uniform(k3, (out_channels, out_channels), jnp.float32, -bound2, bound2),
        "b2": jax.random.uniform(k4, (1, out_channels), jnp.float32, -bound2, bound2),
        "g2": jnp.ones((1, out_channels), jnp.float32),
        "be2": jnp.zeros((1, out_channels), jnp.float32),
    }


def _reference_f32(x, p):
    """Plain-JAX f32 reference with full PyTorch semantics (biases included,
    training-mode BN with biased variance)."""
    h = x @ p["w1"] + p["b1"]
    m = h.mean(0, keepdims=True)
    v = ((h - m) ** 2).mean(0, keepdims=True)
    h = jnp.maximum((h - m) / jnp.sqrt(v + BN_EPS) * p["g1"] + p["be1"], 0.0)
    h2 = h @ p["w2"] + p["b2"]
    m2 = h2.mean(0, keepdims=True)
    v2 = ((h2 - m2) ** 2).mean(0, keepdims=True)
    return jnp.maximum((h2 - m2) / jnp.sqrt(v2 + BN_EPS) * p["g2"] + p["be2"], 0.0)


def _reference_bf16(x, p):
    """Mirror of the kernel's math (bf16 matmuls, f32 accumulation, two-pass BN, no bias)."""
    def stage(h, g, be):
        m = h.mean(0, keepdims=True)
        c = h - m
        v = (c * c).mean(0, keepdims=True)
        s = g * jax.lax.rsqrt(v + BN_EPS)
        return jnp.maximum(c * s + be, 0.0)

    h = jnp.dot(x.astype(jnp.bfloat16), p["w1"].astype(jnp.bfloat16),
                preferred_element_type=jnp.float32)
    h = stage(h, p["g1"], p["be1"]).astype(jnp.bfloat16)
    h2 = jnp.dot(h, p["w2"].astype(jnp.bfloat16), preferred_element_type=jnp.float32)
    return stage(h2, p["g2"], p["be2"])


if __name__ == "__main__":
    key = jax.random.PRNGKey(0)

    def run_check(B, c_in, c_out, k):
        kx, kp = jax.random.split(k)
        x = jax.random.normal(kx, (B, c_in), dtype=jnp.float32)
        params = init_params(kp, c_in, c_out)
        prepped = prepare_params(params, c_in)            # hoisted, done once
        run = jax.jit(functools.partial(fully_connected_block, c_out=c_out))
        out = jax.block_until_ready(run(x, prepped))
        assert out.shape == (B, c_out)
        # Tight check vs a reference mirroring the kernel's bf16 matmul math.
        ref16 = _reference_bf16(x, params)
        assert jnp.allclose(out, ref16, atol=1e-2, rtol=1e-2), "mismatch vs bf16 reference"
        # Loose semantic check vs the full-precision PyTorch-semantics reference.
        ref32 = _reference_f32(x, params)
        assert jnp.allclose(out, ref32, atol=2e-1, rtol=0.0), "mismatch vs f32 module reference"

    ka, kb = jax.random.split(key)
    run_check(8, 32, 32, ka)        # small demo shape (single feature tile)
    run_check(16, 300, 260, kb)     # exercises padding + multi-tile weight streaming

    print("KERNEL_OK")
</pallas_src>

<mosaic_0001>
module attributes {stable_mosaic.version = 11 : i64} {
  func.func @_fused_block_kernel(%arg0: i32, %arg1: i32, %arg2: memref<8x128xbf16, #tpu.memory_space<vmem>>, %arg3: memref<128x128xbf16, #tpu.memory_space<vmem>>, %arg4: memref<1x128xf32, #tpu.memory_space<vmem>>, %arg5: memref<1x128xf32, #tpu.memory_space<vmem>>, %arg6: memref<128x128xbf16, #tpu.memory_space<vmem>>, %arg7: memref<1x128xf32, #tpu.memory_space<vmem>>, %arg8: memref<1x128xf32, #tpu.memory_space<vmem>>, %arg9: memref<8x128xf32, #tpu.memory_space<vmem>>, %arg10: memref<8x128xbf16, #tpu.memory_space<vmem>>) attributes {dimension_semantics = [#tpu.dimension_semantics<arbitrary>, #tpu.dimension_semantics<arbitrary>], iteration_bounds = array<i64: 2, 1>, scalar_prefetch = 0 : i64, scratch_operands = 1 : i64, tpu.core_type = #tpu.core_type<tc>, window_params = [{pipeline_mode = #tpu.pipeline_mode<synchronous>, transform_indices = @transform_0, window_bounds = array<i64: 8, 128>}, {transform_indices = @transform_1, window_bounds = array<i64: 128, 128>}, {transform_indices = @transform_2, window_bounds = array<i64: 1, 128>}, {transform_indices = @transform_3, window_bounds = array<i64: 1, 128>}, {transform_indices = @transform_4, window_bounds = array<i64: 128, 128>}, {transform_indices = @transform_5, window_bounds = array<i64: 1, 128>}, {transform_indices = @transform_6, window_bounds = array<i64: 1, 128>}, {transform_indices = @transform_7, window_bounds = array<i64: 8, 128>}]} {
    %c0_i32 = arith.constant 0 : i32
    %0 = arith.cmpi eq, %arg0, %c0_i32 : i32
    %1 = arith.extui %0 : i1 to i32
    %c0_i32_0 = arith.constant 0 : i32
    %2 = arith.cmpi ne, %1, %c0_i32_0 : i32
    scf.if %2 {
      %c0 = arith.constant 0 : index
      %c0_2 = arith.constant 0 : index
      %6 = vector.load %arg2[%c0, %c0_2] : memref<8x128xbf16, #tpu.memory_space<vmem>>, vector<8x128xbf16>
      %c0_3 = arith.constant 0 : index
      %c0_4 = arith.constant 0 : index
      %7 = vector.load %arg3[%c0_3, %c0_4] : memref<128x128xbf16, #tpu.memory_space<vmem>>, vector<128x128xbf16>
      %cst = arith.constant dense<0.000000e+00> : vector<8x128xf32>
      %8 = tpu.matmul %6, %7, %cst {dimension_numbers = #tpu.dot_dimension_numbers<[1], [0], [0], [1], [0, 0, 1, 1], [], []>} : vector<8x128xbf16>, vector<128x128xbf16>, vector<8x128xf32> -> vector<8x128xf32>
      %c0_5 = arith.constant 0 : index
      %c0_6 = arith.constant 0 : index
      %9 = vector.load %arg4[%c0_5, %c0_6] : memref<1x128xf32, #tpu.memory_space<vmem>>, vector<1x128xf32>
      %c0_7 = arith.constant 0 : index
      %c0_8 = arith.constant 0 : index
      %10 = vector.load %arg5[%c0_7, %c0_8] : memref<1x128xf32, #tpu.memory_space<vmem>>, vector<1x128xf32>
      %cst_9 = arith.constant dense<0.000000e+00> : vector<128xf32>
      %11 = vector.multi_reduction <add>, %8, %cst_9 [0] : vector<8x128xf32> to vector<128xf32>
      %12 = vector.shape_cast %11 : vector<128xf32> to vector<1x128xf32>
      %cst_10 = arith.constant 8.000000e+00 : f32
      %13 = vector.broadcast %cst_10 : f32 to vector<1x128xf32>
      %14 = arith.divf %12, %13 : vector<1x128xf32>
      %15 = vector.broadcast %14 : vector<1x128xf32> to vector<8x128xf32>
      %16 = arith.subf %8, %15 : vector<8x128xf32>
      %17 = arith.mulf %16, %16 : vector<8x128xf32>
      %cst_11 = arith.constant dense<0.000000e+00> : vector<128xf32>
      %18 = vector.multi_reduction <add>, %17, %cst_11 [0] : vector<8x128xf32> to vector<128xf32>
      %19 = vector.shape_cast %18 : vector<128xf32> to vector<1x128xf32>
      %cst_12 = arith.constant 8.000000e+00 : f32
      %20 = vector.broadcast %cst_12 : f32 to vector<1x128xf32>
      %21 = arith.divf %19, %20 : vector<1x128xf32>
      %cst_13 = arith.constant 9.99999974E-6 : f32
      %22 = vector.broadcast %cst_13 : f32 to vector<1x128xf32>
      %23 = arith.addf %21, %22 : vector<1x128xf32>
      %24 = math.rsqrt %23 : vector<1x128xf32>
      %25 = arith.mulf %9, %24 : vector<1x128xf32>
      %26 = vector.broadcast %25 : vector<1x128xf32> to vector<8x128xf32>
      %27 = arith.mulf %16, %26 : vector<8x128xf32>
      %28 = vector.broadcast %10 : vector<1x128xf32> to vector<8x128xf32>
      %29 = arith.addf %27, %28 : vector<8x128xf32>
      %cst_14 = arith.constant 0.000000e+00 : f32
      %30 = vector.broadcast %cst_14 : f32 to vector<8x128xf32>
      %31 = arith.maximumf %29, %30 : vector<8x128xf32>
      %c128_i32 = arith.constant 128 : i32
      %32 = arith.muli %arg1, %c128_i32 : i32
      %33 = tpu.assume_multiple %32, 128 : i32
      %34 = arith.truncf %31 : vector<8x128xf32> to vector<8x128xbf16>
      %c0_15 = arith.constant 0 : index
      %35 = arith.index_cast %33 : i32 to index
      %36 = vector.load %arg10[%c0_15, %35] : memref<8x128xbf16, #tpu.memory_space<vmem>>, vector<8x128xbf16>
      tpu.vector_store %arg10[%c0_15, %35], %34 {strides = array<i32>} : memref<8x128xbf16, #tpu.memory_space<vmem>>, vector<8x128xbf16>,
    } else {
    }
    %c1_i32 = arith.constant 1 : i32
    %3 = arith.cmpi eq, %arg0, %c1_i32 : i32
    %4 = arith.extui %3 : i1 to i32
    %c0_i32_1 = arith.constant 0 : i32
    %5 = arith.cmpi ne, %4, %c0_i32_1 : i32
    scf.if %5 {
      %c0 = arith.constant 0 : index
      %c0_2 = arith.constant 0 : index
      %6 = vector.load %arg10[%c0, %c0_2] : memref<8x128xbf16, #tpu.memory_space<vmem>>, vector<8x128xbf16>
      %c0_3 = arith.constant 0 : index
      %c0_4 = arith.constant 0 : index
      %7 = vector.load %arg6[%c0_3, %c0_4] : memref<128x128xbf16, #tpu.memory_space<vmem>>, vector<128x128xbf16>
      %cst = arith.constant dense<0.000000e+00> : vector<8x128xf32>
      %8 = tpu.matmul %6, %7, %cst {dimension_numbers = #tpu.dot_dimension_numbers<[1], [0], [0], [1], [0, 0, 1, 1], [], []>} : vector<8x128xbf16>, vector<128x128xbf16>, vector<8x128xf32> -> vector<8x128xf32>
      %c0_5 = arith.constant 0 : index
      %c0_6 = arith.constant 0 : index
      %9 = vector.load %arg7[%c0_5, %c0_6] : memref<1x128xf32, #tpu.memory_space<vmem>>, vector<1x128xf32>
      %c0_7 = arith.constant 0 : index
      %c0_8 = arith.constant 0 : index
      %10 = vector.load %arg8[%c0_7, %c0_8] : memref<1x128xf32, #tpu.memory_space<vmem>>, vector<1x128xf32>
      %cst_9 = arith.constant dense<0.000000e+00> : vector<128xf32>
      %11 = vector.multi_reduction <add>, %8, %cst_9 [0] : vector<8x128xf32> to vector<128xf32>
      %12 = vector.shape_cast %11 : vector<128xf32> to vector<1x128xf32>
      %cst_10 = arith.constant 8.000000e+00 : f32
      %13 = vector.broadcast %cst_10 : f32 to vector<1x128xf32>
      %14 = arith.divf %12, %13 : vector<1x128xf32>
      %15 = vector.broadcast %14 : vector<1x128xf32> to vector<8x128xf32>
      %16 = arith.subf %8, %15 : vector<8x128xf32>
      %17 = arith.mulf %16, %16 : vector<8x128xf32>
      %cst_11 = arith.constant dense<0.000000e+00> : vector<128xf32>
      %18 = vector.multi_reduction <add>, %17, %cst_11 [0] : vector<8x128xf32> to vector<128xf32>
      %19 = vector.shape_cast %18 : vector<128xf32> to vector<1x128xf32>
      %cst_12 = arith.constant 8.000000e+00 : f32
      %20 = vector.broadcast %cst_12 : f32 to vector<1x128xf32>
      %21 = arith.divf %19, %20 : vector<1x128xf32>
      %cst_13 = arith.constant 9.99999974E-6 : f32
      %22 = vector.broadcast %cst_13 : f32 to vector<1x128xf32>
      %23 = arith.addf %21, %22 : vector<1x128xf32>
      %24 = math.rsqrt %23 : vector<1x128xf32>
      %25 = arith.mulf %9, %24 : vector<1x128xf32>
      %26 = vector.broadcast %25 : vector<1x128xf32> to vector<8x128xf32>
      %27 = arith.mulf %16, %26 : vector<8x128xf32>
      %28 = vector.broadcast %10 : vector<1x128xf32> to vector<8x128xf32>
      %29 = arith.addf %27, %28 : vector<8x128xf32>
      %cst_14 = arith.constant 0.000000e+00 : f32
      %30 = vector.broadcast %cst_14 : f32 to vector<8x128xf32>
      %31 = arith.maximumf %29, %30 : vector<8x128xf32>
      %c0_15 = arith.constant 0 : index
      %c0_16 = arith.constant 0 : index
      %32 = vector.load %arg9[%c0_15, %c0_16] : memref<8x128xf32, #tpu.memory_space<vmem>>, vector<8x128xf32>
      tpu.vector_store %arg9[%c0_15, %c0_16], %31 {strides = array<i32>} : memref<8x128xf32, #tpu.memory_space<vmem>>, vector<8x128xf32>,
    } else {
    }
    return
  }
  func.func @transform_0(%arg0: i32, %arg1: i32) -> (i32, i32) {
    %c0_i32 = arith.constant 0 : i32
    %c0_i32_0 = arith.constant 0 : i32
    %c0_i32_1 = arith.constant 0 : i32
    return %c0_i32, %c0_i32_0 : i32, i32
  }
  func.func @transform_1(%arg0: i32, %arg1: i32) -> (i32, i32) {
    %c1_i32 = arith.constant 1 : i32
    %0 = arith.subi %c1_i32, %arg0 : i32
    %1 = arith.muli %arg1, %0 : i32
    %c0_i32 = arith.constant 0 : i32
    %2 = arith.muli %c0_i32, %arg0 : i32
    %3 = arith.addi %1, %2 : i32
    %c0_i32_0 = arith.constant 0 : i32
    %c0_i32_1 = arith.constant 0 : i32
    return %c0_i32_0, %3 : i32, i32
  }
  func.func @transform_2(%arg0: i32, %arg1: i32) -> (i32, i32) {
    %c1_i32 = arith.constant 1 : i32
    %0 = arith.subi %c1_i32, %arg0 : i32
    %1 = arith.muli %arg1, %0 : i32
    %c0_i32 = arith.constant 0 : i32
    %2 = arith.muli %c0_i32, %arg0 : i32
    %3 = arith.addi %1, %2 : i32
    %c0_i32_0 = arith.constant 0 : i32
    %c0_i32_1 = arith.constant 0 : i32
    return %c0_i32_0, %3 : i32, i32
  }
  func.func @transform_3(%arg0: i32, %arg1: i32) -> (i32, i32) {
    %c1_i32 = arith.constant 1 : i32
    %0 = arith.subi %c1_i32, %arg0 : i32
    %1 = arith.muli %arg1, %0 : i32
    %c0_i32 = arith.constant 0 : i32
    %2 = arith.muli %c0_i32, %arg0 : i32
    %3 = arith.addi %1, %2 : i32
    %c0_i32_0 = arith.constant 0 : i32
    %c0_i32_1 = arith.constant 0 : i32
    return %c0_i32_0, %3 : i32, i32
  }
  func.func @transform_4(%arg0: i32, %arg1: i32) -> (i32, i32) {
    %0 = arith.muli %arg1, %arg0 : i32
    %c0_i32 = arith.constant 0 : i32
    %c0_i32_0 = arith.constant 0 : i32
    return %c0_i32, %0 : i32, i32
  }
  func.func @transform_5(%arg0: i32, %arg1: i32) -> (i32, i32) {
    %0 = arith.muli %arg1, %arg0 : i32
    %c0_i32 = arith.constant 0 : i32
    %c0_i32_0 = arith.constant 0 : i32
    return %c0_i32, %0 : i32, i32
  }
  func.func @transform_6(%arg0: i32, %arg1: i32) -> (i32, i32) {
    %0 = arith.muli %arg1, %arg0 : i32
    %c0_i32 = arith.constant 0 : i32
    %c0_i32_0 = arith.constant 0 : i32
    return %c0_i32, %0 : i32, i32
  }
  func.func @transform_7(%arg0: i32, %arg1: i32) -> (i32, i32) {
    %0 = arith.muli %arg1, %arg0 : i32
    %c0_i32 = arith.constant 0 : i32
    %c0_i32_0 = arith.constant 0 : i32
    return %c0_i32, %0 : i32, i32
  }
}

</mosaic_0001>

<bundles_post_ra>
// kernel: fully_connected_block.1
= control target key start
LH: loop header
LB: loop body
LE: loop exit
PB: predicated region body
PF: predicated region fallthrough
CT: control target
= control target key end

     0   :  { %12 = vsyncpa [#allocation4], 0  ;;  %s1349_s0 = inlined_call_operand.vmem [shape: bf16[8,128], index: 0, kind: input, shape index: {}]   ;;  %s1350_s1 = inlined_call_operand.hbm [shape: bf16[128,128], index: 1, kind: input, shape index: {}]   ;;  %s1351_s2 = inlined_call_operand.vmem [shape: f32[1,128], index: 2, kind: input, shape index: {}]   ;;  %s1352_s3 = inlined_call_operand.vmem [shape: f32[1,128], index: 3, kind: input, shape index: {}]   ;;  %s1353_s4 = inlined_call_operand.hbm [shape: bf16[128,128], index: 4, kind: input, shape index: {}]   ;;  %s1354_s5 = inlined_call_operand.vmem [shape: f32[1,128], index: 5, kind: input, shape index: {}]   ;;  %s1355_s6 = inlined_call_operand.vmem [shape: f32[1,128], index: 6, kind: input, shape index: {}]   ;;  %s1356_s7 = inlined_call_operand.hbm [shape: f32[8,128], index: 7, kind: output, shape index: {}]  }
   0x1   :  { %14 = vsyncpa [#allocation4 + $0x1], 0 }
   0x2   :  { %15 = vsyncpa [#allocation7], 0 }
   0x3   :  { %17 = vsyncpa [#allocation7 + $0x1], 0 }
   0x4   :  { %18 = vsyncpa [#allocation5], 0 }
   0x5   :  { %20 = vsyncpa [#allocation5 + $0x1], 0  ;;  %s1255_s24 = smov 0   ;;  %s1257_s25 = smov 0  }
   0x6   :  { %s1259_s26 = smov 0  }
   0x7 LB: > { %s915_s27 = sadd.s32 4294967295, %s1204_s26   ;;  %s916_s28 = sadd.s32 4294967294, %s1204_s26   ;;  %s1204_s26 = sphi %s1259_s26, %s26_s26   ;;  %s1200_s25 = sphi %s1257_s25, %s1360_s25   ;;  %s1196_s24 = sphi %s1255_s24, %s1359_s24  }
   0x8   : > { %s38_s29 = sadd.s32 1, %s1200_s25  ;;  %p918_p0 = scmp.ge.s32.totalorder %s1204_s26, 2 }
   0x9   : > { %p40_p1 = scmp.ge.s32.totalorder %s38_s29, 2  ;;  %p1033_p2 = scmp.lt.s32.totalorder %s1204_s26, 2 }
   0xa   : > { %p1034_p3 = scmp.eq.s32.totalorder %s1204_s26, 0  ;;  %s1206_s8 = smov [#allocation3]  }
   0xb   : > { %s1362_s29 = smov (%p40_p1, %s38_s29), 0  ;;  %s294_s9 = sshll.u32 %s1206_s8, 4  ;;  %s295_s9 = int_to_ptr.vmem [resolvable:$true] %s294_s9 }
   0xc   : > { %p1278_p4 = pnand %p1034_p3, %p1033_p2  ;;  %p925_p5 = scmp.ge.s32.totalorder %s1204_s26, 1 }
   0xd   : > { %s1105_s10 = scalar_lea.vmem %s295_s9, 1024  ;;  %s1112_s11 = scalar_lea.vmem %s295_s9, 2048 }
   0xe   : > { %p1096_p6 = pneg %p1278_p4  ;;  %p1106_p7 = scmp.ne.s32.totalorder %s295_s9, %s1105_s10 }
   0xf   : > { %p1113_p10 = scmp.lt.s32.totalorder %s295_s9, %s295_s9  ;;  %p1114_p11 = scmp.lt.s32.totalorder %s1112_s11, %s1105_s10 }
  0x10   : > { %p1108_p8 = pnand %p1106_p7, %p1096_p6 }
  0x11   : > { %p1115_p12 = por %p1114_p11, %p1113_p10 }
  0x12   : > { %p1109_p9 = pneg %p1108_p8 }
  0x14   : > { %p1116_p13 = pnand %p1115_p12, %p1109_p9 }
  0x16   : > { %1119 = shalt.err (!%p1116_p13)
}
  0x17   : > { %s1207_s12 = smov 64   ;;  %s1208_s13 = smov 4  }
  0x18   : > { %1025 = dma.hbm_to_vmem [thread:$0]  (!%p1278_p4), %s1350_s1, 1024, %s295_s9, [#allocation4], %s1207_s12, %s1207_s12, %s1208_s13  }
  0x19   : > { %p359_p1 = scmp.lt.s32.totalorder %s1204_s26, 3  ;;  %s1209_s16 = smov [#allocation6]  }
  0x1a   : > { %s335_s17 = sshll.u32 %s1209_s16, 4  ;;  %s336_s17 = int_to_ptr.vmem [resolvable:$true] %s335_s17 }
  0x1b   : > { %p360_p2 = pnand %p925_p5, %p359_p1  ;;  %s1131_s18 = scalar_lea.vmem %s336_s17, 1024 }
  0x1c   : > { %p1132_p3 = scmp.ne.s32.totalorder %s336_s17, %s1131_s18  ;;  %s1138_s19 = scalar_lea.vmem %s336_s17, 2048 }
  0x1d   : > { %p1139_p9 = scmp.lt.s32.totalorder %s336_s17, %s336_s17  ;;  %p1140_p10 = scmp.lt.s32.totalorder %s1138_s19, %s1131_s18 }
  0x1e   : > { %p1134_p7 = pnand %p1132_p3, %p1096_p6 }
  0x1f   : > { %p1141_p11 = por %p1140_p10, %p1139_p9 }
  0x20   : > { %p1135_p8 = pneg %p1134_p7 }
  0x22   : > { %p1142_p12 = pnand %p1141_p11, %p1135_p8 }
  0x24   : > { %1145 = shalt.err (!%p1142_p12)
}
  0x25   : > { %1028 = dma.hbm_to_vmem [thread:$0]  (!%p1278_p4), %s1353_s4, 1024, %s336_s17, [#allocation7], %s1207_s12, %s1207_s12, %s1208_s13  }
  0x26   : > { %363 = sbr.rel (%p360_p2) target bundleno = 645 (0x285), region = 48  ;;  %p1036_p5 = scmp.eq.s32.totalorder (!%p360_p2), %s915_s27, 0 }
  0x2b   : > { %1183 = dma.done.wait (%p1036_p5), [#allocation4], 1024  }
  0x2c   : > { %1185 = vsyncadd (%p1036_p5), [#allocation4], 4294966272 }
  0x2d   : > { %1187 = dma.done.wait (%p1036_p5), [#allocation7], 1024  }
  0x2e   : > { %1189 = vsyncadd (%p1036_p5), [#allocation7], 4294966272  ;;  %p928_p6 = scmp.ne.s32.totalorder %s1196_s24, 0 }
  0x30   : > { %464 = sbr.rel (%p928_p6) target bundleno = 340 (0x154), region = 60 }
  0x35   : > { %v1074_v0 = vld [vmem:[#allocation3 + $0x38] sm:$0xff]   ;;  %v1210_v1 = vmov 0.0   ;;  %v1075_v2 = vld [vmem:[#allocation3 + $0x30] sm:$0xff]   ;;  %vm1211_vm0 = vmmov 0   ;;  %v1076_v3 = vld [vmem:[#allocation3 + $0x28] sm:$0xff]   ;;  %v593_v31 = vlaneseq }
  0x36   : > { %970 = vmatprep.subr.bf16.mxu0 %v1210_v1  ;;  %986 = vmatprep.mubr.msk.bf16.mxu0 %vm1211_vm0, %v1210_v1  ;;  %v1077_v4 = vld [vmem:[#allocation3 + $0x20] sm:$0xff]   ;;  %v1078_v5 = vld [vmem:[#allocation3 + $0x18] sm:$0xff]   ;;  %v1079_v6 = vld [vmem:[#allocation3 + $0x10] sm:$0xff]  }
  0x37   : > { %971 = vmatpush3.bf16.msra.mxu0 %v1074_v0  ;;  %v1080_v7 = vld [vmem:[#allocation3 + $0x8] sm:$0xff]   ;;  %v1081_v8 = vld [vmem:[#allocation3] sm:$0xff]   ;;  %v465_v9 = vld [vmem:[%s1349_s0] sm:$0xf]  ;;  %v594_v32 = vshrl.u32 %v593_v31, 7 }
  0x38   : > { %972 = vmatprep.subr.bf16.mxu0 %v1210_v1  ;;  %v570_v33 = vld [vmem:[%s1351_s2] sm:$0x1] }
  0x39   : > { %v595_v34 = vsub.s32 0, %v594_v32  ;;  %v937_v38 = vld [vmem:[%s1352_s3] ss:$0 sm:$0xff] }
  0x3b   : > { %973 = vmatpush3.bf16.msra.mxu0 %v1075_v2 }
  0x3c   : > { %974 = vmatprep.subr.bf16.mxu0 %v1210_v1 }
  0x3f   : > { %975 = vmatpush3.bf16.msra.mxu0 %v1076_v3 }
  0x40   : > { %976 = vmatprep.subr.bf16.mxu0 %v1210_v1 }
  0x43   : > { %977 = vmatpush3.bf16.msra.mxu0 %v1077_v4 }
  0x44   : > { %978 = vmatprep.subr.bf16.mxu0 %v1210_v1 }
  0x47   : > { %979 = vmatpush3.bf16.msra.mxu0 %v1078_v5 }
  0x48   : > { %980 = vmatprep.subr.bf16.mxu0 %v1210_v1 }
  0x4b   : > { %981 = vmatpush3.bf16.msra.mxu0 %v1079_v6 }
  0x4c   : > { %982 = vmatprep.subr.bf16.mxu0 %v1210_v1 }
  0x4f   : > { %983 = vmatpush3.bf16.msra.mxu0 %v1080_v7 }
  0x50   : > { %984 = vmatprep.subr.bf16.mxu0 %v1210_v1 }
  0x53   : > { %985 = vmatpush3.bf16.msra.mxu0 %v1081_v8 }
  0x56   : > { %987 = vmatmul.mubr.bf16.vlgmr.msra.gmra.mxu0 %v465_v9 }
 0x116   : > { %v564_v10 = vpop.f32.mrf.mxu0 }
 0x117   : > { %v572_v11 = vrot.slane %v564_v10, 4 }
 0x118   : > { %v988_v12 = vpop.f32.mrf.mxu0 }
 0x119   : > { %v573_v13 = vadd.f32 %v572_v11, %v564_v10 }
 0x11a   : > { %v567_v14 = vpop.f32.mrf.mxu0 }
 0x11b   : > { %v574_v15 = vrot.slane %v573_v13, 2 }
 0x11c   : > { %v989_v16 = vpop.f32.mrf.mxu0 }
 0x11d   : > { %v575_v17 = vadd.f32 %v574_v15, %v573_v13 }
 0x11f   : > { %v576_v18 = vrot.slane %v575_v17, 1 }
 0x121   : > { %v577_v19 = vadd.f32 %v576_v18, %v575_v17 }
 0x123   : > { %v579_v20 = vmul.f32 0.125, %v577_v19 }
 0x125   : > { %v580_v21 = vsub.f32 %v564_v10, %v579_v20 }
 0x127   : > { %v581_v22 = vmul.f32 %v580_v21, %v580_v21 }
 0x129   : > { %v582_v23 = vrot.slane %v581_v22, 4 }
 0x12b   : > { %v583_v24 = vadd.f32 %v582_v23, %v581_v22 }
 0x12d   : > { %v584_v25 = vrot.slane %v583_v24, 2 }
 0x12f   : > { %v585_v26 = vadd.f32 %v584_v25, %v583_v24 }
 0x131   : > { %v586_v27 = vrot.slane %v585_v26, 1 }
 0x133   : > { %v587_v28 = vadd.f32 %v586_v27, %v585_v26 }
 0x135   : > { %v588_v29 = vmul.f32 0.125, %v587_v28 }
 0x137   : > { %v589_v30 = vadd.f32 1e-05, %v588_v29 }
 0x139   : > { %1082 = vrsqrt.f32 %v589_v30 }
 0x146   : > { %v1083_v35 = vpop.eup %1082 }
 0x147   : > { %v591_v36 = vmul.f32 %v1083_v35, %v570_v33 }
 0x149   : > { %v596_v37 = vrot.slane %v591_v36, %v595_v34 }
 0x14b   : > { %v598_v39 = vmul.f32 %v596_v37, %v580_v21 }
 0x14d   : > { %v605_v40 = vadd.f32 %v937_v38, %v598_v39 }
 0x14f   : > { %v606_v41 = vmax.f32 %v605_v40, 0.0 }
 0x151   : > { %v608_v42 = vpack.c.bf16 %v606_v41, %v606_v41 }
 0x153   : > { %613 = vst [vmem:[#allocation2] sm:$0xf] %v608_v42 }
 0x154 PF: > { %p938_p4 = scmp.ne.s32.totalorder %s1196_s24, 1 }
 0x156   : > { %617 = sbr.rel (%p938_p4) target bundleno = 632 (0x278), region = 64 }
 0x15b   : > { %v1084_v43 = vld [vmem:[#allocation6 + $0x38] sm:$0xff]   ;;  %v1212_v44 = vmov 0.0   ;;  %v1085_v45 = vld [vmem:[#allocation6 + $0x30] sm:$0xff]   ;;  %vm1213_vm1 = vmmov 0   ;;  %v1086_v46 = vld [vmem:[#allocation6 + $0x28] sm:$0xff]   ;;  %v746_v10 = vlaneseq }
 0x15c   : > { %990 = vmatprep.subr.bf16.mxu0 %v1212_v44  ;;  %1006 = vmatprep.mubr.msk.bf16.mxu0 %vm1213_vm1, %v1212_v44  ;;  %v1087_v47 = vld [vmem:[#allocation6 + $0x20] sm:$0xff]   ;;  %v1088_v48 = vld [vmem:[#allocation6 + $0x18] sm:$0xff]   ;;  %v1089_v49 = vld [vmem:[#allocation6 + $0x10] sm:$0xff]  }
 0x15d   : > { %991 = vmatpush3.bf16.msra.mxu0 %v1084_v43  ;;  %v1090_v50 = vld [vmem:[#allocation6 + $0x8] sm:$0xff]   ;;  %v1091_v51 = vld [vmem:[#allocation6] sm:$0xff]   ;;  %v618_v52 = vld [vmem:[#allocation2] sm:$0xf]  ;;  %v747_v11 = vshrl.u32 %v746_v10, 7 }
 0x15e   : > { %992 = vmatprep.subr.bf16.mxu0 %v1212_v44  ;;  %v723_v12 = vld [vmem:[%s1354_s5] sm:$0x1] }
 0x15f   : > { %v748_v13 = vsub.s32 0, %v747_v11  ;;  %v947_v17 = vld [vmem:[%s1355_s6] ss:$0 sm:$0xff] }
 0x161   : > { %993 = vmatpush3.bf16.msra.mxu0 %v1085_v45 }
 0x162   : > { %994 = vmatprep.subr.bf16.mxu0 %v1212_v44 }
 0x165   : > { %995 = vmatpush3.bf16.msra.mxu0 %v1086_v46 }
 0x166   : > { %996 = vmatprep.subr.bf16.mxu0 %v1212_v44 }
 0x169   : > { %997 = vmatpush3.bf16.msra.mxu0 %v1087_v47 }
 0x16a   : > { %998 = vmatprep.subr.bf16.mxu0 %v1212_v44 }
 0x16d   : > { %999 = vmatpush3.bf16.msra.mxu0 %v1088_v48 }
 0x16e   : > { %1000 = vmatprep.subr.bf16.mxu0 %v1212_v44 }
 0x171   : > { %1001 = vmatpush3.bf16.msra.mxu0 %v1089_v49 }
 0x172   : > { %1002 = vmatprep.subr.bf16.mxu0 %v1212_v44 }
 0x175   : > { %1003 = vmatpush3.bf16.msra.mxu0 %v1090_v50 }
 0x176   : > { %1004 = vmatprep.subr.bf16.mxu0 %v1212_v44 }
 0x179   : > { %1005 = vmatpush3.bf16.msra.mxu0 %v1091_v51 }
 0x17c   : > { %1007 = vmatmul.mubr.bf16.vlgmr.msra.gmra.mxu0 %v618_v52 }
 0x23c   : > { %v717_v53 = vpop.f32.mrf.mxu0 }
 0x23d   : > { %v725_v54 = vrot.slane %v717_v53, 4 }
 0x23e   : > { %v1008_v55 = vpop.f32.mrf.mxu0 }
 0x23f   : > { %v726_v56 = vadd.f32 %v725_v54, %v717_v53 }
 0x240   : > { %v720_v57 = vpop.f32.mrf.mxu0 }
 0x241   : > { %v727_v58 = vrot.slane %v726_v56, 2 }
 0x242   : > { %v1009_v59 = vpop.f32.mrf.mxu0 }
 0x243   : > { %v728_v60 = vadd.f32 %v727_v58, %v726_v56 }
 0x245   : > { %v729_v61 = vrot.slane %v728_v60, 1 }
 0x247   : > { %v730_v62 = vadd.f32 %v729_v61, %v728_v60 }
 0x249   : > { %v732_v63 = vmul.f32 0.125, %v730_v62 }
 0x24b   : > { %v733_v0 = vsub.f32 %v717_v53, %v732_v63 }
 0x24d   : > { %v734_v1 = vmul.f32 %v733_v0, %v733_v0 }
 0x24f   : > { %v735_v2 = vrot.slane %v734_v1, 4 }
 0x251   : > { %v736_v3 = vadd.f32 %v735_v2, %v734_v1 }
 0x253   : > { %v737_v4 = vrot.slane %v736_v3, 2 }
 0x255   : > { %v738_v5 = vadd.f32 %v737_v4, %v736_v3 }
 0x257   : > { %v739_v6 = vrot.slane %v738_v5, 1 }
 0x259   : > { %v740_v7 = vadd.f32 %v739_v6, %v738_v5 }
 0x25b   : > { %v741_v8 = vmul.f32 0.125, %v740_v7 }
 0x25d   : > { %v742_v9 = vadd.f32 1e-05, %v741_v8 }
 0x25f   : > { %1092 = vrsqrt.f32 %v742_v9 }
 0x26c   : > { %v1093_v14 = vpop.eup %1092 }
 0x26d   : > { %v744_v15 = vmul.f32 %v1093_v14, %v723_v12 }
 0x26f   : > { %v749_v16 = vrot.slane %v744_v15, %v748_v13 }
 0x271   : > { %v751_v18 = vmul.f32 %v749_v16, %v733_v0 }
 0x273   : > { %v758_v19 = vadd.f32 %v947_v17, %v751_v18 }
 0x275   : > { %v759_v20 = vmax.f32 %v758_v19, 0.0 }
 0x277   : > { %760 = vst [vmem:[#allocation8] sm:$0xff] %v759_v20 }
 0x278 PF: > { %p1325_p13 = scmp.eq.s32.totalorder %s915_s27, 1  ;;  %s1214_s15 = smov [#allocation8]  }
 0x279   : > { %s776_s16 = sshll.u32 %s1214_s15, 4  ;;  %s777_s16 = int_to_ptr.vmem [resolvable:$true] %s776_s16 }
 0x27a   : > { %s1146_s17 = scalar_lea.vmem %s777_s16, 128  ;;  %s1152_s18 = scalar_lea.vmem %s777_s16, 256 }
 0x27b   : > { %p1147_p1 = scmp.ne.s32.totalorder %s777_s16, %s1146_s17  ;;  %p1153_p7 = scmp.lt.s32.totalorder %s777_s16, %s777_s16 }
 0x27c   : > { %p1154_p8 = scmp.lt.s32.totalorder %s1152_s18, %s1146_s17 }
 0x27d   : > { %p1148_p2 = pnand %p1147_p1, %p1325_p13 }
 0x27e   : > { %p1155_p9 = por %p1154_p8, %p1153_p7 }
 0x27f   : > { %p1149_p3 = pneg %p1148_p2 }
 0x281   : > { %p1156_p10 = pnand %p1155_p9, %p1149_p3 }
 0x283   : > { %1159 = shalt.err (!%p1156_p10)
}
 0x284   : > { %1019 = dma.vmem_to_hbm [thread:$0]  (%p1325_p13), %s777_s16, 128, %s1356_s7, [#allocation5]  }
 0x285 PF: > { %p1040_p11 = scmp.eq.s32.totalorder %s916_s28, 1 }
 0x287   : > { %p1030_p12 = pnand %p1040_p11, %p918_p0 }
 0x289   : > { %p1031_p5 = pneg %p1030_p12 }
 0x28b   : > { %1191 = dma.done.wait (%p1031_p5), [#allocation5], 128  }
 0x28c   : > { %1193 = vsyncadd (%p1031_p5), [#allocation5], 4294967168  ;;  %s26_s26 = sadd.s32 1, %s1204_s26   ;;  %s1359_s24 = smov %s1200_s25 }
 0x28d   : > { %p23_p6 = scmp.ge.s32.totalorder %s26_s26, 4   ;;  %s1360_s25 = smov %s1362_s29 }
 0x28f   :  { %25 = sbr.rel (!%p23_p6) target bundleno = 7 (0x7), region = 127 }
 0x294   :  { %794 = vsyncpa [#allocation4], 1 }
 0x295   :  { %796 = vsyncpa [#allocation4 + $0x1], 1 }
 0x296   :  { %797 = vsyncpa [#allocation7], 1 }
 0x297   :  { %799 = vsyncpa [#allocation7 + $0x1], 1 }
 0x298   :  { %800 = vsyncpa [#allocation5], 1 }
 0x299   :  { %802 = vsyncpa [#allocation5 + $0x1], 1 }

</bundles_post_ra>
